<compile_context>
chip_gen: v7x
topology: tpu7x:2x2x1
jax: 0.10.0
libtpu: 0.0.40
codegen_flags: <defaults>
</compile_context>

<pallas_src>
import functools

import jax
import jax.numpy as jnp
from jax.experimental import pallas as pl
from jax.experimental.pallas import tpu as pltpu


def att_pooling_kernel(v_ref, q_ref, w1_ref, b1_ref, w2_ref, b2_ref,
                       wm_ref, bm_ref, gam_ref, bet_ref, wp_ref, bp_ref,
                       logits_ref, attw_ref, *, ln_eps):
    Bb, N, H = v_ref.shape
    G = w2_ref.shape[1]

    x3 = v_ref[...].astype(jnp.float32)              # (Bb, N, H)
    x2 = x3.reshape(Bb * N, H)                       # leading-dim merge (free: N % 8 == 0)

    # ---- MLP over all Bb*N token rows: two well-filled 2-D MXU matmuls ----
    h = jnp.dot(x2, w1_ref[...], preferred_element_type=jnp.float32) + b1_ref[...]
    h = jnp.maximum(h, 0.0)                                               # (Bb*N, M)
    att_tok = (jnp.dot(h, w2_ref[...], preferred_element_type=jnp.float32)
               + b2_ref[...])                                             # (Bb*N, G)
    att_ng = att_tok.reshape(Bb, N, G)                                    # token-major

    # make_mask: token rows whose |x| row-sum is zero (lane-axis reduce, no matmul),
    # applied token-major so the (Bb, N, 1) mask broadcasts along the G lanes.
    absum = jnp.sum(jnp.abs(x3), axis=-1, keepdims=True)                  # (Bb, N, 1)
    att_ng = jnp.where(absum == 0.0, -1.0e9, att_ng)

    # Glimpse-major relayout (one small XLU minor-dim transpose) so the softmax
    # reductions run along the lane axis and the attw store stays N-on-lanes.
    att = jnp.transpose(att_ng, (0, 2, 1))                                # (Bb, G, N)

    # Softmax over the token axis (last / lane axis), exact normalization.
    att = att - jnp.max(att, axis=-1, keepdims=True)
    p = jnp.exp(att)
    att = p / jnp.sum(p, axis=-1, keepdims=True)                          # (Bb, G, N)

    attw_ref[...] = att.astype(attw_ref.dtype)        # lane-dense store (N on lanes)

    # Glimpse-weighted token sums: batched MXU matmul (production form; at toy N
    # the launches are overhead-dominated, but the VPU alternative needs an
    # unaligned relayout of att -- see header note).
    xa = jnp.einsum('bgn,bnh->bgh', att, x3,
                    preferred_element_type=jnp.float32)                   # (Bb, G, H)

    # linear_merge over the concatenated glimpses: sum_g xa[:, g] @ wm[g].
    # G independent (Bb, H) @ (H, F) matmuls + a single add (no serial chain).
    parts = [jnp.dot(xa[:, g, :], wm_ref[g], preferred_element_type=jnp.float32)
             for g in range(G)]
    merged = functools.reduce(lambda u, w: u + w, parts) + bm_ref[...]    # (Bb, F)

    # Residual add with q, LayerNorm(flat_out_size), proj, sigmoid.
    a = q_ref[...].astype(jnp.float32) + merged                           # (Bb, F)
    mu = jnp.mean(a, axis=-1, keepdims=True)
    var = jnp.mean((a - mu) * (a - mu), axis=-1, keepdims=True)
    a = (a - mu) * jax.lax.rsqrt(var + ln_eps) * gam_ref[...] + bet_ref[...]

    out = jnp.dot(a, wp_ref[...], preferred_element_type=jnp.float32) + bp_ref[...]
    logits_ref[...] = jax.nn.sigmoid(out).astype(logits_ref.dtype)


def _num_tensorcores_per_chip():
    """Best-effort detection of 2-TensorCore chips (v7x); defaults to 1."""
    try:
        kind = jax.devices()[0].device_kind.lower()
    except Exception:
        return 1
    return 2 if ("v7" in kind or "7x" in kind) else 1


def att_pooling(v, q, params, *, num_glimpses, ln_eps=1e-5, block_b=None,
                weight_buffer_count=None):
    (w1, b1, w2, b2, wm, bm, gam, bet, wp, bp) = params
    B, N, H = v.shape
    M = w1.shape[1]
    G = num_glimpses
    F = wm.shape[-1]
    C = wp.shape[-1]

    if block_b is None:
        # Single grid step on 1-TC chips (v5e/v6e): a second step is pure overhead
        # (~0.35 us + another pipeline round over the 10 weight operands) and
        # halves MXU sublane fill.  Split 2-way only where 2 TCs can run the
        # "parallel" steps concurrently (v7x).
        if _num_tensorcores_per_chip() >= 2 and B % 2 == 0 and B >= 2:
            block_b = B // 2
        else:
            block_b = B
    assert B % block_b == 0, "batch must be divisible by block_b"
    nsteps = B // block_b

    # Wrapper-side layout plumbing (free): 3-D glimpse-major merge weight, and
    # q/logits grouped as (steps, block_b, feat) so every per-step block equals the
    # full trailing dims (keeps the (8,128)-divisibility rule trivially satisfied).
    q3 = q.reshape(nsteps, block_b, F)
    wm3 = wm.reshape(G, H, F)

    def wspec(shape, index_map):
        # Constant-index weight operands.  weight_buffer_count=1 single-buffers
        # them (reclaims double-buffer VMEM) -- worth it for production-size
        # weights on v7x's 64 MiB VMEM; left at the default for these tiny tiles.
        if weight_buffer_count is None:
            return pl.BlockSpec(shape, index_map)
        return pl.BlockSpec(shape, index_map,
                            pipeline_mode=pl.Buffered(weight_buffer_count))

    kernel = functools.partial(att_pooling_kernel, ln_eps=ln_eps)

    logits3, attw_gn = pl.pallas_call(
        kernel,
        out_shape=(
            jax.ShapeDtypeStruct((nsteps, block_b, C), jnp.float32),
            jax.ShapeDtypeStruct((B, G, N), jnp.float32),     # glimpse-major att
        ),
        grid=(nsteps,),
        in_specs=[
            pl.BlockSpec((block_b, N, H), lambda b: (b, 0, 0)),      # v
            pl.BlockSpec((None, block_b, F), lambda b: (b, 0, 0)),   # q (squeezed lead)
            wspec((H, M), lambda b: (0, 0)),        # mlp.fc.linear.weight (in,out)
            wspec((1, M), lambda b: (0, 0)),        # mlp.fc.linear.bias
            wspec((M, G), lambda b: (0, 0)),        # mlp.linear.weight (in,out)
            wspec((1, G), lambda b: (0, 0)),        # mlp.linear.bias
            wspec((G, H, F), lambda b: (0, 0, 0)),  # linear_merge.weight (glimpse,in,out)
            wspec((1, F), lambda b: (0, 0)),        # linear_merge.bias
            wspec((1, F), lambda b: (0, 0)),        # proj_norm.gamma
            wspec((1, F), lambda b: (0, 0)),        # proj_norm.beta
            wspec((F, C), lambda b: (0, 0)),        # proj.weight (in,out)
            wspec((1, C), lambda b: (0, 0)),        # proj.bias
        ],
        out_specs=(
            pl.BlockSpec((None, block_b, C), lambda b: (b, 0, 0)),   # logits
            pl.BlockSpec((block_b, G, N), lambda b: (b, 0, 0)),      # att weights
        ),
        compiler_params=pltpu.CompilerParams(
            dimension_semantics=("parallel",),
            vmem_limit_bytes=32 * 1024 * 1024),
    )(v, q3, w1, b1, w2, b2, wm3, bm, gam, bet, wp, bp)

    logits = logits3.reshape(B, C)
    att_w = jnp.swapaxes(attw_gn, 1, 2)               # back to (B, N, G)
    return logits, att_w


def ref_forward(v, q, params, *, num_glimpses, ln_eps=1e-5):
    """Pure-JAX reference mirroring the PyTorch forward."""
    (w1, b1, w2, b2, wm, bm, gam, bet, wp, bp) = params
    B = v.shape[0]
    mask = (jnp.sum(jnp.abs(v), axis=-1) == 0)[..., None]            # (B, N, 1)
    h = jnp.maximum(v @ w1 + b1, 0.0)
    att = h @ w2 + b2
    att = jnp.where(mask, -1.0e9, att)
    att = jax.nn.softmax(att, axis=1)
    xa = jnp.einsum('bng,bnh->bgh', att, v)                           # (B, G, H)
    x_atted = xa.reshape(B, -1)                                       # cat over glimpses
    merged = x_atted @ wm.reshape(-1, wm.shape[-1]) + bm
    a = q + merged
    mu = jnp.mean(a, -1, keepdims=True)
    var = jnp.mean((a - mu) ** 2, -1, keepdims=True)
    a = (a - mu) / jnp.sqrt(var + ln_eps) * gam + bet
    logits = jax.nn.sigmoid(a @ wp + bp)
    return logits, att


if __name__ == "__main__":
    # args: num_hid = hidden_size = 32, flat_mlp_size = 32, flat_glimpses = 2,
    #       flat_out_size = 32, num_classes = 16, dropout_rate = 0.0 (eval).
    B, N, H, M, G, F, C = 8, 8, 32, 32, 2, 32, 16

    key = jax.random.PRNGKey(0)
    ks = jax.random.split(key, 12)

    v = jax.random.normal(ks[0], (B, N, H), jnp.float32)
    # zero out some token rows so make_mask / masked_fill is exercised
    v = v.at[1, N - 2:, :].set(0.0)
    v = v.at[5, :3, :].set(0.0)
    q = jax.random.normal(ks[1], (B, F), jnp.float32)

    s = 0.1
    params = (
        s * jax.random.normal(ks[2], (H, M), jnp.float32),            # w1
        s * jax.random.normal(ks[3], (1, M), jnp.float32),            # b1
        s * jax.random.normal(ks[4], (M, G), jnp.float32),            # w2
        s * jax.random.normal(ks[5], (1, G), jnp.float32),            # b2
        s * jax.random.normal(ks[6], (G, H, F), jnp.float32),         # linear_merge weight
        s * jax.random.normal(ks[7], (1, F), jnp.float32),            # linear_merge bias
        1.0 + 0.1 * jax.random.normal(ks[8], (1, F), jnp.float32),    # LN gamma
        0.1 * jax.random.normal(ks[9], (1, F), jnp.float32),          # LN beta
        s * jax.random.normal(ks[10], (F, C), jnp.float32),           # proj weight
        s * jax.random.normal(ks[11], (1, C), jnp.float32),           # proj bias
    )

    logits, v_w = att_pooling(v, q, params, num_glimpses=G)
    jax.block_until_ready((logits, v_w))

    ref_logits, ref_w = ref_forward(v, q, params, num_glimpses=G)
    # Exact softmax normalization -> tolerance tightened vs. the previous
    # approx-reciprocal version (residual error is matmul reassociation only).
    assert jnp.allclose(logits, ref_logits, atol=2e-4, rtol=2e-4)
    assert jnp.allclose(v_w, ref_w, atol=2e-4, rtol=2e-4)

    print("KERNEL_OK")
</pallas_src>

<mosaic_0001>
module attributes {stable_mosaic.version = 11 : i64} {
  func.func @att_pooling_kernel(%arg0: i32, %arg1: memref<8x8x32xf32, #tpu.memory_space<vmem>>, %arg2: memref<1x8x32xf32, #tpu.memory_space<vmem>>, %arg3: memref<32x32xf32, #tpu.memory_space<vmem>>, %arg4: memref<1x32xf32, #tpu.memory_space<vmem>>, %arg5: memref<32x2xf32, #tpu.memory_space<vmem>>, %arg6: memref<1x2xf32, #tpu.memory_space<vmem>>, %arg7: memref<2x32x32xf32, #tpu.memory_space<vmem>>, %arg8: memref<1x32xf32, #tpu.memory_space<vmem>>, %arg9: memref<1x32xf32, #tpu.memory_space<vmem>>, %arg10: memref<1x32xf32, #tpu.memory_space<vmem>>, %arg11: memref<32x16xf32, #tpu.memory_space<vmem>>, %arg12: memref<1x16xf32, #tpu.memory_space<vmem>>, %arg13: memref<1x8x16xf32, #tpu.memory_space<vmem>>, %arg14: memref<8x2x8xf32, #tpu.memory_space<vmem>>) attributes {dimension_semantics = [#tpu.dimension_semantics<parallel>], iteration_bounds = array<i64: 1>, scalar_prefetch = 0 : i64, scratch_operands = 0 : i64, tpu.core_type = #tpu.core_type<tc>, window_params = [{transform_indices = @transform_0, window_bounds = array<i64: 8, 8, 32>}, {transform_indices = @transform_1, window_bounds = array<i64: 1, 8, 32>}, {pipeline_mode = #tpu.pipeline_mode<synchronous>, transform_indices = @transform_2, window_bounds = array<i64: 32, 32>}, {pipeline_mode = #tpu.pipeline_mode<synchronous>, transform_indices = @transform_3, window_bounds = array<i64: 1, 32>}, {pipeline_mode = #tpu.pipeline_mode<synchronous>, transform_indices = @transform_4, window_bounds = array<i64: 32, 2>}, {pipeline_mode = #tpu.pipeline_mode<synchronous>, transform_indices = @transform_5, window_bounds = array<i64: 1, 2>}, {pipeline_mode = #tpu.pipeline_mode<synchronous>, transform_indices = @transform_6, window_bounds = array<i64: 2, 32, 32>}, {pipeline_mode = #tpu.pipeline_mode<synchronous>, transform_indices = @transform_7, window_bounds = array<i64: 1, 32>}, {pipeline_mode = #tpu.pipeline_mode<synchronous>, transform_indices = @transform_8, window_bounds = array<i64: 1, 32>}, {pipeline_mode = #tpu.pipeline_mode<synchronous>, transform_indices = @transform_9, window_bounds = array<i64: 1, 32>}, {pipeline_mode = #tpu.pipeline_mode<synchronous>, transform_indices = @transform_10, window_bounds = array<i64: 32, 16>}, {pipeline_mode = #tpu.pipeline_mode<synchronous>, transform_indices = @transform_11, window_bounds = array<i64: 1, 16>}, {transform_indices = @transform_12, window_bounds = array<i64: 1, 8, 16>}, {transform_indices = @transform_13, window_bounds = array<i64: 8, 2, 8>}]} {
    %c0 = arith.constant 0 : index
    %c0_0 = arith.constant 0 : index
    %c0_1 = arith.constant 0 : index
    %0 = vector.load %arg1[%c0, %c0_0, %c0_1] : memref<8x8x32xf32, #tpu.memory_space<vmem>>, vector<8x8x32xf32>
    %1 = vector.shape_cast %0 : vector<8x8x32xf32> to vector<64x32xf32>
    %c0_2 = arith.constant 0 : index
    %c0_3 = arith.constant 0 : index
    %2 = vector.load %arg3[%c0_2, %c0_3] : memref<32x32xf32, #tpu.memory_space<vmem>>, vector<32x32xf32>
    %cst = arith.constant dense<0.000000e+00> : vector<64x32xf32>
    %3 = tpu.matmul %1, %2, %cst {dimension_numbers = #tpu.dot_dimension_numbers<[1], [0], [0], [1], [0, 0, 1, 1], [], []>} : vector<64x32xf32>, vector<32x32xf32>, vector<64x32xf32> -> vector<64x32xf32>
    %c0_4 = arith.constant 0 : index
    %c0_5 = arith.constant 0 : index
    %4 = vector.load %arg4[%c0_4, %c0_5] : memref<1x32xf32, #tpu.memory_space<vmem>>, vector<1x32xf32>
    %5 = vector.broadcast %4 : vector<1x32xf32> to vector<64x32xf32>
    %6 = arith.addf %3, %5 : vector<64x32xf32>
    %cst_6 = arith.constant 0.000000e+00 : f32
    %7 = vector.broadcast %cst_6 : f32 to vector<64x32xf32>
    %8 = arith.maximumf %6, %7 : vector<64x32xf32>
    %c0_7 = arith.constant 0 : index
    %c0_8 = arith.constant 0 : index
    %9 = vector.load %arg5[%c0_7, %c0_8] : memref<32x2xf32, #tpu.memory_space<vmem>>, vector<32x2xf32>
    %cst_9 = arith.constant dense<0.000000e+00> : vector<64x2xf32>
    %10 = tpu.matmul %8, %9, %cst_9 {dimension_numbers = #tpu.dot_dimension_numbers<[1], [0], [0], [1], [0, 0, 1, 1], [], []>} : vector<64x32xf32>, vector<32x2xf32>, vector<64x2xf32> -> vector<64x2xf32>
    %c0_10 = arith.constant 0 : index
    %c0_11 = arith.constant 0 : index
    %11 = vector.load %arg6[%c0_10, %c0_11] : memref<1x2xf32, #tpu.memory_space<vmem>>, vector<1x2xf32>
    %12 = vector.broadcast %11 : vector<1x2xf32> to vector<64x2xf32>
    %13 = arith.addf %10, %12 : vector<64x2xf32>
    %14 = vector.shape_cast %13 : vector<64x2xf32> to vector<8x8x2xf32>
    %15 = math.absf %0 : vector<8x8x32xf32>
    %cst_12 = arith.constant dense<0.000000e+00> : vector<8x8xf32>
    %16 = vector.multi_reduction <add>, %15, %cst_12 [2] : vector<8x8x32xf32> to vector<8x8xf32>
    %17 = vector.shape_cast %16 : vector<8x8xf32> to vector<8x8x1xf32>
    %cst_13 = arith.constant 0.000000e+00 : f32
    %18 = vector.broadcast %cst_13 : f32 to vector<8x8x1xf32>
    %19 = arith.cmpf oeq, %17, %18 : vector<8x8x1xf32>
    %cst_14 = arith.constant -1.000000e+09 : f32
    %20 = vector.shape_cast %19 : vector<8x8x1xi1> to vector<8x8x1xi1>
    %21 = vector.broadcast %20 : vector<8x8x1xi1> to vector<8x8x2xi1>
    %22 = vector.broadcast %cst_14 : f32 to vector<8x8x2xf32>
    %23 = arith.select %21, %22, %14 : vector<8x8x2xi1>, vector<8x8x2xf32>
    %24 = tpu.transpose %23, [0, 2, 1] : vector<8x8x2xf32> -> vector<8x2x8xf32>
    %cst_15 = arith.constant dense<0xFF800000> : vector<8x2xf32>
    %25 = vector.multi_reduction <maximumf>, %24, %cst_15 [2] : vector<8x2x8xf32> to vector<8x2xf32>
    %26 = vector.shape_cast %25 : vector<8x2xf32> to vector<8x2x1xf32>
    %27 = vector.broadcast %26 : vector<8x2x1xf32> to vector<8x2x8xf32>
    %28 = arith.subf %24, %27 : vector<8x2x8xf32>
    %29 = math.exp %28 : vector<8x2x8xf32>
    %cst_16 = arith.constant dense<0.000000e+00> : vector<8x2xf32>
    %30 = vector.multi_reduction <add>, %29, %cst_16 [2] : vector<8x2x8xf32> to vector<8x2xf32>
    %31 = vector.shape_cast %30 : vector<8x2xf32> to vector<8x2x1xf32>
    %32 = vector.broadcast %31 : vector<8x2x1xf32> to vector<8x2x8xf32>
    %33 = arith.divf %29, %32 : vector<8x2x8xf32>
    %c0_17 = arith.constant 0 : index
    %c0_18 = arith.constant 0 : index
    %c0_19 = arith.constant 0 : index
    %34 = vector.load %arg14[%c0_17, %c0_18, %c0_19] : memref<8x2x8xf32, #tpu.memory_space<vmem>>, vector<8x2x8xf32>
    tpu.vector_store %arg14[%c0_17, %c0_18, %c0_19], %33 {strides = array<i32>} : memref<8x2x8xf32, #tpu.memory_space<vmem>>, vector<8x2x8xf32>,
    "tpu.trace_start"() <{level = 10 : i32, message = "bgn,bnh->bgh"}> : () -> ()
    %cst_20 = arith.constant dense<0.000000e+00> : vector<8x2x32xf32>
    %35 = tpu.matmul %33, %0, %cst_20 {dimension_numbers = #tpu.dot_dimension_numbers<[2], [1], [1], [2], [0, 0, 0, 1, 1, 2], [0], [0]>} : vector<8x2x8xf32>, vector<8x8x32xf32>, vector<8x2x32xf32> -> vector<8x2x32xf32>
    "tpu.trace_stop"() : () -> ()
    %36 = vector.extract_strided_slice %35 {offsets = [0, 0, 0], sizes = [8, 1, 32], strides = [1, 1, 1]} : vector<8x2x32xf32> to vector<8x1x32xf32>
    %37 = vector.shape_cast %36 : vector<8x1x32xf32> to vector<8x32xf32>
    %c0_21 = arith.constant 0 : index
    %c0_22 = arith.constant 0 : index
    %c0_23 = arith.constant 0 : index
    %38 = vector.load %arg7[%c0_21, %c0_22, %c0_23] : memref<2x32x32xf32, #tpu.memory_space<vmem>>, vector<1x32x32xf32>
    %39 = vector.shape_cast %38 : vector<1x32x32xf32> to vector<32x32xf32>
    %cst_24 = arith.constant dense<0.000000e+00> : vector<8x32xf32>
    %40 = tpu.matmul %37, %39, %cst_24 {dimension_numbers = #tpu.dot_dimension_numbers<[1], [0], [0], [1], [0, 0, 1, 1], [], []>} : vector<8x32xf32>, vector<32x32xf32>, vector<8x32xf32> -> vector<8x32xf32>
    %41 = vector.extract_strided_slice %35 {offsets = [0, 1, 0], sizes = [8, 1, 32], strides = [1, 1, 1]} : vector<8x2x32xf32> to vector<8x1x32xf32>
    %42 = vector.shape_cast %41 : vector<8x1x32xf32> to vector<8x32xf32>
    %c1 = arith.constant 1 : index
    %c0_25 = arith.constant 0 : index
    %c0_26 = arith.constant 0 : index
    %43 = vector.load %arg7[%c1, %c0_25, %c0_26] : memref<2x32x32xf32, #tpu.memory_space<vmem>>, vector<1x32x32xf32>
    %44 = vector.shape_cast %43 : vector<1x32x32xf32> to vector<32x32xf32>
    %cst_27 = arith.constant dense<0.000000e+00> : vector<8x32xf32>
    %45 = tpu.matmul %42, %44, %cst_27 {dimension_numbers = #tpu.dot_dimension_numbers<[1], [0], [0], [1], [0, 0, 1, 1], [], []>} : vector<8x32xf32>, vector<32x32xf32>, vector<8x32xf32> -> vector<8x32xf32>
    %46 = arith.addf %40, %45 : vector<8x32xf32>
    %c0_28 = arith.constant 0 : index
    %c0_29 = arith.constant 0 : index
    %47 = vector.load %arg8[%c0_28, %c0_29] : memref<1x32xf32, #tpu.memory_space<vmem>>, vector<1x32xf32>
    %48 = vector.broadcast %47 : vector<1x32xf32> to vector<8x32xf32>
    %49 = arith.addf %46, %48 : vector<8x32xf32>
    %c0_30 = arith.constant 0 : index
    %c0_31 = arith.constant 0 : index
    %c0_32 = arith.constant 0 : index
    %50 = vector.load %arg2[%c0_30, %c0_31, %c0_32] : memref<1x8x32xf32, #tpu.memory_space<vmem>>, vector<1x8x32xf32>
    %51 = vector.shape_cast %50 : vector<1x8x32xf32> to vector<8x32xf32>
    %52 = arith.addf %51, %49 : vector<8x32xf32>
    %cst_33 = arith.constant dense<0.000000e+00> : vector<8xf32>
    %53 = vector.multi_reduction <add>, %52, %cst_33 [1] : vector<8x32xf32> to vector<8xf32>
    %54 = vector.shape_cast %53 : vector<8xf32> to vector<8x1xf32>
    %cst_34 = arith.constant 3.200000e+01 : f32
    %55 = vector.broadcast %cst_34 : f32 to vector<8x1xf32>
    %56 = arith.divf %54, %55 : vector<8x1xf32>
    %57 = vector.broadcast %56 : vector<8x1xf32> to vector<8x32xf32>
    %58 = arith.subf %52, %57 : vector<8x32xf32>
    %59 = vector.broadcast %56 : vector<8x1xf32> to vector<8x32xf32>
    %60 = arith.subf %52, %59 : vector<8x32xf32>
    %61 = arith.mulf %58, %60 : vector<8x32xf32>
    %cst_35 = arith.constant dense<0.000000e+00> : vector<8xf32>
    %62 = vector.multi_reduction <add>, %61, %cst_35 [1] : vector<8x32xf32> to vector<8xf32>
    %63 = vector.shape_cast %62 : vector<8xf32> to vector<8x1xf32>
    %cst_36 = arith.constant 3.200000e+01 : f32
    %64 = vector.broadcast %cst_36 : f32 to vector<8x1xf32>
    %65 = arith.divf %63, %64 : vector<8x1xf32>
    %66 = vector.broadcast %56 : vector<8x1xf32> to vector<8x32xf32>
    %67 = arith.subf %52, %66 : vector<8x32xf32>
    %cst_37 = arith.constant 9.99999974E-6 : f32
    %68 = vector.broadcast %cst_37 : f32 to vector<8x1xf32>
    %69 = arith.addf %65, %68 : vector<8x1xf32>
    %70 = math.rsqrt %69 : vector<8x1xf32>
    %71 = vector.broadcast %70 : vector<8x1xf32> to vector<8x32xf32>
    %72 = arith.mulf %67, %71 : vector<8x32xf32>
    %c0_38 = arith.constant 0 : index
    %c0_39 = arith.constant 0 : index
    %73 = vector.load %arg9[%c0_38, %c0_39] : memref<1x32xf32, #tpu.memory_space<vmem>>, vector<1x32xf32>
    %74 = vector.broadcast %73 : vector<1x32xf32> to vector<8x32xf32>
    %75 = arith.mulf %72, %74 : vector<8x32xf32>
    %c0_40 = arith.constant 0 : index
    %c0_41 = arith.constant 0 : index
    %76 = vector.load %arg10[%c0_40, %c0_41] : memref<1x32xf32, #tpu.memory_space<vmem>>, vector<1x32xf32>
    %77 = vector.broadcast %76 : vector<1x32xf32> to vector<8x32xf32>
    %78 = arith.addf %75, %77 : vector<8x32xf32>
    %c0_42 = arith.constant 0 : index
    %c0_43 = arith.constant 0 : index
    %79 = vector.load %arg11[%c0_42, %c0_43] : memref<32x16xf32, #tpu.memory_space<vmem>>, vector<32x16xf32>
    %cst_44 = arith.constant dense<0.000000e+00> : vector<8x16xf32>
    %80 = tpu.matmul %78, %79, %cst_44 {dimension_numbers = #tpu.dot_dimension_numbers<[1], [0], [0], [1], [0, 0, 1, 1], [], []>} : vector<8x32xf32>, vector<32x16xf32>, vector<8x16xf32> -> vector<8x16xf32>
    %c0_45 = arith.constant 0 : index
    %c0_46 = arith.constant 0 : index
    %81 = vector.load %arg12[%c0_45, %c0_46] : memref<1x16xf32, #tpu.memory_space<vmem>>, vector<1x16xf32>
    %82 = vector.broadcast %81 : vector<1x16xf32> to vector<8x16xf32>
    %83 = arith.addf %80, %82 : vector<8x16xf32>
    %84 = arith.negf %83 : vector<8x16xf32>
    %85 = math.exp %84 : vector<8x16xf32>
    %cst_47 = arith.constant 1.000000e+00 : f32
    %86 = vector.broadcast %cst_47 : f32 to vector<8x16xf32>
    %87 = arith.addf %86, %85 : vector<8x16xf32>
    %88 = arith.divf %86, %87 : vector<8x16xf32>
    %c0_48 = arith.constant 0 : index
    %c0_49 = arith.constant 0 : index
    %c0_50 = arith.constant 0 : index
    %89 = vector.load %arg13[%c0_48, %c0_49, %c0_50] : memref<1x8x16xf32, #tpu.memory_space<vmem>>, vector<1x8x16xf32>
    %90 = vector.shape_cast %89 : vector<1x8x16xf32> to vector<8x16xf32>
    %91 = vector.shape_cast %88 : vector<8x16xf32> to vector<1x8x16xf32>
    tpu.vector_store %arg13[%c0_48, %c0_49, %c0_50], %91 {strides = array<i32>} : memref<1x8x16xf32, #tpu.memory_space<vmem>>, vector<1x8x16xf32>,
    return
  }
  func.func @transform_0(%arg0: i32) -> (i32, i32, i32) {
    %c0_i32 = arith.constant 0 : i32
    %c0_i32_0 = arith.constant 0 : i32
    %c0_i32_1 = arith.constant 0 : i32
    return %arg0, %c0_i32, %c0_i32_0 : i32, i32, i32
  }
  func.func @transform_1(%arg0: i32) -> (i32, i32, i32) {
    %c0_i32 = arith.constant 0 : i32
    %c0_i32_0 = arith.constant 0 : i32
    %c0_i32_1 = arith.constant 0 : i32
    return %arg0, %c0_i32, %c0_i32_0 : i32, i32, i32
  }
  func.func @transform_2(%arg0: i32) -> (i32, i32) {
    %c0_i32 = arith.constant 0 : i32
    %c0_i32_0 = arith.constant 0 : i32
    %c0_i32_1 = arith.constant 0 : i32
    return %c0_i32, %c0_i32_0 : i32, i32
  }
  func.func @transform_3(%arg0: i32) -> (i32, i32) {
    %c0_i32 = arith.constant 0 : i32
    %c0_i32_0 = arith.constant 0 : i32
    %c0_i32_1 = arith.constant 0 : i32
    return %c0_i32, %c0_i32_0 : i32, i32
  }
  func.func @transform_4(%arg0: i32) -> (i32, i32) {
    %c0_i32 = arith.constant 0 : i32
    %c0_i32_0 = arith.constant 0 : i32
    %c0_i32_1 = arith.constant 0 : i32
    return %c0_i32, %c0_i32_0 : i32, i32
  }
  func.func @transform_5(%arg0: i32) -> (i32, i32) {
    %c0_i32 = arith.constant 0 : i32
    %c0_i32_0 = arith.constant 0 : i32
    %c0_i32_1 = arith.constant 0 : i32
    return %c0_i32, %c0_i32_0 : i32, i32
  }
  func.func @transform_6(%arg0: i32) -> (i32, i32, i32) {
    %c0_i32 = arith.constant 0 : i32
    %c0_i32_0 = arith.constant 0 : i32
    %c0_i32_1 = arith.constant 0 : i32
    %c0_i32_2 = arith.constant 0 : i32
    return %c0_i32, %c0_i32_0, %c0_i32_1 : i32, i32, i32
  }
  func.func @transform_7(%arg0: i32) -> (i32, i32) {
    %c0_i32 = arith.constant 0 : i32
    %c0_i32_0 = arith.constant 0 : i32
    %c0_i32_1 = arith.constant 0 : i32
    return %c0_i32, %c0_i32_0 : i32, i32
  }
  func.func @transform_8(%arg0: i32) -> (i32, i32) {
    %c0_i32 = arith.constant 0 : i32
    %c0_i32_0 = arith.constant 0 : i32
    %c0_i32_1 = arith.constant 0 : i32
    return %c0_i32, %c0_i32_0 : i32, i32
  }
  func.func @transform_9(%arg0: i32) -> (i32, i32) {
    %c0_i32 = arith.constant 0 : i32
    %c0_i32_0 = arith.constant 0 : i32
    %c0_i32_1 = arith.constant 0 : i32
    return %c0_i32, %c0_i32_0 : i32, i32
  }
  func.func @transform_10(%arg0: i32) -> (i32, i32) {
    %c0_i32 = arith.constant 0 : i32
    %c0_i32_0 = arith.constant 0 : i32
    %c0_i32_1 = arith.constant 0 : i32
    return %c0_i32, %c0_i32_0 : i32, i32
  }
  func.func @transform_11(%arg0: i32) -> (i32, i32) {
    %c0_i32 = arith.constant 0 : i32
    %c0_i32_0 = arith.constant 0 : i32
    %c0_i32_1 = arith.constant 0 : i32
    return %c0_i32, %c0_i32_0 : i32, i32
  }
  func.func @transform_12(%arg0: i32) -> (i32, i32, i32) {
    %c0_i32 = arith.constant 0 : i32
    %c0_i32_0 = arith.constant 0 : i32
    %c0_i32_1 = arith.constant 0 : i32
    return %arg0, %c0_i32, %c0_i32_0 : i32, i32, i32
  }
  func.func @transform_13(%arg0: i32) -> (i32, i32, i32) {
    %c0_i32 = arith.constant 0 : i32
    %c0_i32_0 = arith.constant 0 : i32
    %c0_i32_1 = arith.constant 0 : i32
    return %arg0, %c0_i32, %c0_i32_0 : i32, i32, i32
  }
}

</mosaic_0001>

<bundles_post_ra>
// kernel: tpu_custom_call.1
= control target key start
LH: loop header
LB: loop body
LE: loop exit
PB: predicated region body
PF: predicated region fallthrough
CT: control target
= control target key end

     0   :  { %19 = vsyncpa [#allocation3], 0  ;;  %s2518_s0 = inlined_call_operand.vmem [shape: f32[8,8,32], index: 0, kind: input, shape index: {}]   ;;  %s2519_s1 = inlined_call_operand.hbm [shape: f32[1,8,32], index: 1, kind: input, shape index: {}]   ;;  %s2520_s2 = inlined_call_operand.hbm [shape: f32[32,32], index: 2, kind: input, shape index: {}]   ;;  %s2521_s3 = inlined_call_operand.vmem [shape: f32[1,32], index: 3, kind: input, shape index: {}]   ;;  %s2522_s4 = inlined_call_operand.vmem [shape: f32[32,2], index: 4, kind: input, shape index: {}]   ;;  %s2523_s5 = inlined_call_operand.vmem [shape: f32[1,2], index: 5, kind: input, shape index: {}]   ;;  %s2524_s6 = inlined_call_operand.hbm [shape: f32[2,32,32], index: 6, kind: input, shape index: {}]   ;;  %s2525_s7 = inlined_call_operand.vmem [shape: f32[1,32], index: 7, kind: input, shape index: {}]   ;;  %s2526_s8 = inlined_call_operand.vmem [shape: f32[1,32], index: 8, kind: input, shape index: {}]   ;;  %s2527_s9 = inlined_call_operand.vmem [shape: f32[1,32], index: 9, kind: input, shape index: {}]   ;;  %s2528_s10 = inlined_call_operand.vmem [shape: f32[32,16], index: 10, kind: input, shape index: {}]   ;;  %s2529_s11 = inlined_call_operand.vmem [shape: f32[1,16], index: 11, kind: input, shape index: {}]   ;;  %s2530_s12 = inlined_call_operand.hbm [shape: f32[1,8,16], index: 12, kind: output, shape index: {0}]   ;;  %s2531_s13 = inlined_call_operand.hbm [shape: f32[8,2,8], index: 13, kind: output, shape index: {1}]  }
   0x1   :  { %20 = vsyncpa [#allocation6], 0 }
   0x2   :  { %21 = vsyncpa [#allocation4], 0 }
   0x3   :  { %22 = vsyncpa [#allocation10], 0  ;;  %s2147_s25 = smov [#allocation5]   ;;  %s2029_s29 = scalar_lea.hbm %s2520_s2, 512 }
   0x4   :  { %s40_s26 = sshll.u32 %s2147_s25, 4  ;;  %p2030_p0 = scmp.ne.s32.totalorder %s2520_s2, %s2029_s29  ;;  %s41_s26 = int_to_ptr.vmem [resolvable:$true] %s40_s26 }
   0x5   :  { %p2033_p1 = scmp.lt.u32.totalorder %s2029_s29, %s2520_s2 }
   0x7   :  { %p2035_p2 = pnand %p2033_p1, %p2030_p0 }
   0x9   :  { %2038 = shalt.err (!%p2035_p2)
}
   0xa   :  { %s2039_s17 = scalar_lea.vmem %s41_s26, 512  ;;  %p2044_p4 = scmp.lt.s32.totalorder %s41_s26, %s41_s26 }
   0xb   :  { %p2040_p3 = scmp.ne.s32.totalorder %s41_s26, %s2039_s17  ;;  %p2045_p5 = scmp.lt.s32.totalorder %s2039_s17, %s2039_s17 }
   0xd   :  { %p2046_p6 = por %p2045_p5, %p2044_p4 }
   0xf   :  { %p2047_p7 = pnand %p2046_p6, %p2040_p3 }
  0x11   :  { %2050 = shalt.err (!%p2047_p7)
}
  0x12   :  { %s2148_s18 = smov 128   ;;  %s2149_s19 = smov 8  }
  0x13   :  { %46 = dma.hbm_to_vmem [thread:$0]  %s2520_s2, 512, %s41_s26, [#allocation6], %s2148_s18, %s2148_s18, %s2149_s19  }
  0x14   :  { %s2150_s22 = smov [#allocation2]   ;;  %s2151_s24 = smov [#allocation7]  }
  0x15   :  { %s31_s23 = sshll.u32 %s2150_s22, 4  ;;  %s58_s25 = sshll.u32 %s2151_s24, 4  ;;  %s32_s23 = int_to_ptr.vmem [resolvable:$true] %s31_s23  ;;  %s59_s25 = int_to_ptr.vmem [resolvable:$true] %s58_s25 }
  0x16   :  { %s2051_s29 = scalar_lea.hbm %s2519_s1, 128 }
  0x17   :  { %p2052_p8 = scmp.ne.s32.totalorder %s2519_s1, %s2051_s29  ;;  %p2055_p9 = scmp.lt.u32.totalorder %s2051_s29, %s2519_s1 }
  0x19   :  { %p2057_p10 = pnand %p2055_p9, %p2052_p8 }
  0x1b   :  { %2060 = shalt.err (!%p2057_p10)
}
  0x1c   :  { %s2061_s2 = scalar_lea.vmem %s32_s23, 128  ;;  %p2066_p12 = scmp.lt.s32.totalorder %s32_s23, %s32_s23 }
  0x1d   :  { %p2062_p11 = scmp.ne.s32.totalorder %s32_s23, %s2061_s2  ;;  %p2067_p13 = scmp.lt.s32.totalorder %s2061_s2, %s2061_s2 }
  0x1f   :  { %p2068_p0 = por %p2067_p13, %p2066_p12 }
  0x21   :  { %p2069_p1 = pnand %p2068_p0, %p2062_p11 }
  0x23   :  { %2072 = shalt.err (!%p2069_p1)
}
  0x24   :  { %34 = dma.hbm_to_vmem [thread:$0]  %s2519_s1, 128, %s32_s23, [#allocation3]  }
  0x25   :  { %s2073_s22 = scalar_lea.hbm %s2524_s6, 1024 }
  0x26   :  { %p2074_p2 = scmp.ne.s32.totalorder %s2524_s6, %s2073_s22  ;;  %p2077_p3 = scmp.lt.u32.totalorder %s2073_s22, %s2524_s6 }
  0x28   :  { %p2079_p4 = pnand %p2077_p3, %p2074_p2 }
  0x2a   :  { %2082 = shalt.err (!%p2079_p4)
}
  0x2b   :  { %s2083_s30 = scalar_lea.vmem %s59_s25, 1024  ;;  %p2088_p6 = scmp.lt.s32.totalorder %s59_s25, %s59_s25 }
  0x2c   :  { %p2084_p5 = scmp.ne.s32.totalorder %s59_s25, %s2083_s30  ;;  %p2089_p7 = scmp.lt.s32.totalorder %s2083_s30, %s2083_s30 }
  0x2e   :  { %p2090_p8 = por %p2089_p7, %p2088_p6 }
  0x30   :  { %p2091_p9 = pnand %p2090_p8, %p2084_p5 }
  0x32   :  { %2094 = shalt.err (!%p2091_p9)
}
  0x33   :  { %64 = dma.hbm_to_vmem [thread:$0]  %s2524_s6, 1024, %s59_s25, [#allocation6], %s2148_s18, %s2148_s18, %s2149_s19  }
  0x34   :  { %2139 = dma.done.wait [#allocation3], 128  }
  0x35   :  { %2140 = vsyncadd [#allocation3], 4294967168 }
  0x36   :  { %2141 = dma.done.wait [#allocation6], 1536  }
  0x37   :  { %2142 = vsyncadd [#allocation6], 4294965760  ;;  %vm103_vm0 = vcmask 261120   ;;  %v92_v0 = vld [vmem:[#allocation5] sm:$0xff]  ;;  %v93_v1 = vld [vmem:[#allocation5 + $0x8] sm:$0xff]  ;;  %vm701_vm9 = vcmask 58368  }
  0x38   :  { %v94_v2 = vld [vmem:[#allocation5 + $0x10] sm:$0xff]  ;;  %v1945_v3 = vpack.c.bf16 %v93_v1, %v92_v0  ;;  %v95_v4 = vld [vmem:[#allocation5 + $0x18] sm:$0xff]  ;;  %v242_v8 = vld [vmem:[%s2522_s4 + $0x8] sm:$0xff]  ;;  %vm2153_vm10 = vmmov 0   ;;  %vm798_vm11 = vcmask 64512   ;;  %vm1401_vm12 = vcmask 1041409  }
  0x39   :  { %v2274_v5 = vld [vmem:[%s2518_s0] sm:$0xff]  ;;  %v1949_v6 = vpack.c.bf16 %v95_v4, %v94_v2  ;;  %v2287_v10 = vld [vmem:[%s2518_s0 + $0x8] sm:$0xff]  ;;  %v2292_v11 = vld [vmem:[%s2518_s0 + $0x10] sm:$0xff]  ;;  %vm1404_vm13 = vcmask 1042434   ;;  %vm1407_vm14 = vcmask 1043459   ;;  %vm1410_vm15 = vcmask 1044484  }
  0x3a   :  { %1840 = vmatprep.mubr.msk.f32.mxu0 %vm103_vm0, %v2274_v5  ;;  %1946 = vmatprep.subr.bf16.mxu0 %v1945_v3  ;;  %v241_v7 = vld [vmem:[%s2522_s4] sm:$0xff]  ;;  %v2301_v12 = vld [vmem:[%s2518_s0 + $0x18] sm:$0xff]  ;;  %v2315_v14 = vld [vmem:[%s2518_s0 + $0x28] sm:$0xff]  ;;  %v381_v20 = vand.u32 2147483647, %v2274_v5 }
  0x3b   :  { %1948 = vmatpush3.bf16.msra.mxu0 %v1945_v3  ;;  %v1953_v9 = vpack.c.bf16 %v242_v8, %v241_v7  ;;  %v2306_v13 = vld [vmem:[%s2518_s0 + $0x20] sm:$0xff]  ;;  %v2320_v15 = vld [vmem:[%s2518_s0 + $0x30] sm:$0xff]  ;;  %v2329_v16 = vld [vmem:[%s2518_s0 + $0x38] sm:$0xff]  ;;  %v383_v21 = vand.u32 2147483647, %v2292_v11 }
  0x3c   :  { %1950 = vmatprep.subr.bf16.mxu0 %v1949_v6  ;;  %v243_v17 = vld [vmem:[%s2522_s4 + $0x10] sm:$0xff]  ;;  %v244_v18 = vld [vmem:[%s2522_s4 + $0x18] sm:$0xff]  ;;  %v382_v22 = vand.u32 2147483647, %v2287_v10  ;;  %v384_v23 = vand.u32 2147483647, %v2301_v12 }
  0x3d   :  { %1954 = vmatprep.subr.bf16.mxu1 %v1953_v9  ;;  %v1957_v19 = vpack.c.bf16 %v244_v18, %v243_v17  ;;  %v389_v24 = vsel %vm103_vm0, %v381_v20, 0.0  ;;  %v395_v25 = vsel %vm103_vm0, %v383_v21, 0.0  ;;  %v385_v28 = vand.u32 2147483647, %v2306_v13  ;;  %v1743_v36 = vld [vmem:[%s2521_s3] ss:$0 sm:$0xff] }
  0x3e   :  { %1956 = vmatpush3.bf16.msra.mxu1 %v1953_v9  ;;  %390 = vadd.xlane.f32.xlu0 %v389_v24  ;;  %v392_v26 = vsel %vm103_vm0, %v382_v22, 0.0  ;;  %v398_v27 = vsel %vm103_vm0, %v384_v23, 0.0  ;;  %v386_v29 = vand.u32 2147483647, %v2315_v14  ;;  %v387_v32 = vand.u32 2147483647, %v2320_v15 }
  0x3f   :  { %1952 = vmatpush3.bf16.msra.mxu0 %v1949_v6  ;;  %1958 = vmatprep.subr.bf16.mxu1 %v1957_v19  ;;  %v401_v30 = vsel %vm103_vm0, %v385_v28, 0.0  ;;  %v388_v33 = vand.u32 2147483647, %v2329_v16  ;;  %v1752_v0 = vld [vmem:[%s2523_s5] ss:$0 sm:$0xff] }
  0x40   :  { %396 = vadd.xlane.f32.xlu1 %v395_v25  ;;  %v404_v31 = vsel %vm103_vm0, %v386_v29, 0.0  ;;  %v407_v34 = vsel %vm103_vm0, %v387_v32, 0.0 }
  0x41   :  { %v410_v35 = vsel %vm103_vm0, %v388_v33, 0.0 }
  0x42   :  { %1841 = vmatmul.mubr.msk.f32.vlgmr.msra.gmra.mrb[0].mxu0 %vm103_vm0, %v2287_v10  ;;  %1960 = vmatpush3.bf16.msra.mxu1 %v1957_v19 }
  0x43   :  { %1843 = vmatprep.mubr.msk.f32.mxu0 %vm103_vm0, %v2292_v11  ;;  %393 = vadd.xlane.f32.xlu0 %v392_v26 }
  0x44   :  { %399 = vadd.xlane.f32.xlu1 %v398_v27 }
  0x46   :  { %1844 = vmatmul.mubr.msk.f32.gmra.mrb[2].mxu0 %vm103_vm0, %v2301_v12 }
  0x47   :  { %1846 = vmatprep.mubr.msk.f32.mxu0 %vm103_vm0, %v2306_v13  ;;  %402 = vadd.xlane.f32.xlu0 %v401_v30 }
  0x48   :  { %405 = vadd.xlane.f32.xlu1 %v404_v31 }
  0x4a   :  { %1847 = vmatmul.mubr.msk.f32.gmra.mrb[4].mxu0 %vm103_vm0, %v2315_v14 }
  0x4b   :  { %1849 = vmatprep.mubr.msk.f32.mxu0 %vm103_vm0, %v2320_v15  ;;  %408 = vadd.xlane.f32.xlu0 %v407_v34 }
  0x4c   :  { %411 = vadd.xlane.f32.xlu1 %v410_v35 }
  0x4e   :  { %1850 = vmatmul.mubr.msk.f32.gmra.mrb[6].mxu0 %vm103_vm0, %v2329_v16 }
  0xcb   :  { %v391_v61 = vpop.xlane.xlu0 %390 }
  0xcc   :  { %vm413_vm2 = vcmp.eq.f32.partialorder %v391_v61, 0.0 }
  0xcd   :  { %v397_v62 = vpop.xlane.xlu1 %396 }
  0xce   :  { %vm415_vm5 = vcmp.eq.f32.partialorder %v397_v62, 0.0 }
  0xd0   :  { %v394_v63 = vpop.xlane.xlu0 %393 }
  0xd1   :  { %vm414_vm1 = vcmp.eq.f32.partialorder %v394_v63, 0.0  ;;  %v400_v4 = vpop.xlane.xlu1 %399 }
  0xd2   :  { %vm416_vm3 = vcmp.eq.f32.partialorder %v400_v4, 0.0 }
  0xd4   :  { %v403_v17 = vpop.xlane.xlu0 %402 }
  0xd5   :  { %v406_v20 = vpop.xlane.xlu1 %405  ;;  %vm417_vm4 = vcmp.eq.f32.partialorder %v403_v17, 0.0 }
  0xd6   :  { %vm418_vm6 = vcmp.eq.f32.partialorder %v406_v20, 0.0 }
  0xd8   :  { %v409_v27 = vpop.xlane.xlu0 %408 }
  0xd9   :  { %v412_v31 = vpop.xlane.xlu1 %411  ;;  %vm419_vm7 = vcmp.eq.f32.partialorder %v409_v27, 0.0 }
  0xda   :  { %vm420_vm8 = vcmp.eq.f32.partialorder %v412_v31, 0.0 }
 0x115   :  { %v1842_v37 = vpop.f32.mrb[0].mxu0 }
 0x116   :  { %v200_v38 = vadd.f32 %v1842_v37, %v1743_v36  ;;  %v194_v39 = vpop.f32.mrb[1].mxu0 }
 0x117   :  { %v195_v40 = vadd.f32 %v1743_v36, %v194_v39 }
 0x118   :  { %v234_v43 = vmax.f32 %v200_v38, 0.0 }
 0x119   :  { %v233_v41 = vmax.f32 %v195_v40, 0.0  ;;  %v1845_v42 = vpop.f32.mrb[2].mxu0 }
 0x11a   :  { %v210_v44 = vadd.f32 %v1845_v42, %v1743_v36  ;;  %v204_v45 = vpop.f32.mrb[3].mxu0 }
 0x11b   :  { %v205_v46 = vadd.f32 %v1743_v36, %v204_v45  ;;  %1860 = vmatprep.mubr.msk.f32.mxu1 %vm103_vm0, %v233_v41 }
 0x11c   :  { %v236_v47 = vmax.f32 %v210_v44, 0.0  ;;  %1861 = vmatmul.mubr.msk.f32.vlgmr.msra.gmra.mrb[0].mxu1 %vm103_vm0, %v234_v43 }
 0x11d   :  { %v235_v48 = vmax.f32 %v205_v46, 0.0  ;;  %v1848_v49 = vpop.f32.mrb[4].mxu0 }
 0x11e   :  { %v220_v50 = vadd.f32 %v1848_v49, %v1743_v36  ;;  %v214_v51 = vpop.f32.mrb[5].mxu0 }
 0x11f   :  { %v215_v52 = vadd.f32 %v1743_v36, %v214_v51  ;;  %1863 = vmatprep.mubr.msk.f32.mxu1 %vm103_vm0, %v235_v48 }
 0x120   :  { %v238_v53 = vmax.f32 %v220_v50, 0.0  ;;  %1864 = vmatmul.mubr.msk.f32.gmra.mrb[2].mxu1 %vm103_vm0, %v236_v47 }
 0x121   :  { %v237_v54 = vmax.f32 %v215_v52, 0.0  ;;  %v1851_v55 = vpop.f32.mrb[6].mxu0 }
 0x122   :  { %v230_v56 = vadd.f32 %v1851_v55, %v1743_v36  ;;  %v224_v57 = vpop.f32.mrb[7].mxu0 }
 0x123   :  { %v225_v58 = vadd.f32 %v1743_v36, %v224_v57  ;;  %1866 = vmatprep.mubr.msk.f32.mxu1 %vm103_vm0, %v237_v54 }
 0x124   :  { %v240_v59 = vmax.f32 %v230_v56, 0.0  ;;  %1867 = vmatmul.mubr.msk.f32.gmra.mrb[4].mxu1 %vm103_vm0, %v238_v53 }
 0x125   :  { %v239_v60 = vmax.f32 %v225_v58, 0.0 }
 0x127   :  { %1869 = vmatprep.mubr.msk.f32.mxu1 %vm103_vm0, %v239_v60 }
 0x128   :  { %1870 = vmatmul.mubr.msk.f32.gmra.mrb[6].mxu1 %vm103_vm0, %v240_v59 }
 0x1ef   :  { %v1862_v1 = vpop.f32.mrb[0].mxu1 }
 0x1f0   :  { %v348_v2 = vadd.f32 %v1862_v1, %v1752_v0  ;;  %v342_v3 = vpop.f32.mrb[1].mxu1 }
 0x1f1   :  { %v343_v6 = vadd.f32 %v1752_v0, %v342_v3 }
 0x1f2   :  { %v438_v7 = vsel %vm414_vm1, -1e+09, %v348_v2  ;;  %vm1413_vm1 = vcmask 1045509  }
 0x1f3   :  { %477 = vxpose.xlu1.b32.start.end [1/1] (short) (narrow) %v438_v7, 8  ;;  %v1865_v8 = vpop.f32.mrb[2].mxu1  ;;  %v437_v9 = vsel %vm413_vm2, -1e+09, %v343_v6  ;;  %vm1416_vm2 = vcmask 1046534  }
 0x1f4   :  { %v358_v18 = vadd.f32 %v1865_v8, %v1752_v0  ;;  %v352_v19 = vpop.f32.mrb[3].mxu1  ;;  %445 = vxpose.xlu0.b32.start.end [1/1] (short) (narrow) %v437_v9, 8 }
 0x1f5   :  { %v353_v22 = vadd.f32 %v1752_v0, %v352_v19 }
 0x1f6   :  { %v440_v21 = vsel %vm416_vm3, -1e+09, %v358_v18  ;;  %vm1419_vm3 = vcmask 1047559  }
 0x1f7   :  { %v1868_v23 = vpop.f32.mrb[4].mxu1  ;;  %v439_v30 = vsel %vm415_vm5, -1e+09, %v353_v22 }
 0x1f8   :  { %v362_v24 = vpop.f32.mrb[5].mxu1  ;;  %541 = vxpose.xlu0.b32.start.end [1/1] (short) (narrow) %v440_v21, 8  ;;  %v368_v25 = vadd.f32 %v1868_v23, %v1752_v0 }
 0x1f9   :  { %v363_v26 = vadd.f32 %v1752_v0, %v362_v24 }
 0x1fa   :  { %v442_v35 = vsel %vm418_vm6, -1e+09, %v368_v25 }
 0x1fb   :  { %v1871_v28 = vpop.f32.mrb[6].mxu1  ;;  %v441_v29 = vsel %vm417_vm4, -1e+09, %v363_v26 }
 0x1fc   :  { %v372_v32 = vpop.f32.mrb[7].mxu1  ;;  %573 = vxpose.xlu1.b32.start.end [1/1] (short) (narrow) %v441_v29, 8  ;;  %509 = vxpose.xlu0.b32.start.end [1/1] (short) (narrow) %v439_v30, 8  ;;  %v378_v33 = vadd.f32 %v1871_v28, %v1752_v0 }
 0x1fd   :  { %v373_v34 = vadd.f32 %v1752_v0, %v372_v32 }
 0x1fe   :  { %v444_v37 = vsel %vm420_vm8, -1e+09, %v378_v33 }
 0x1ff   :  { %v443_v36 = vsel %vm419_vm7, -1e+09, %v373_v34 }
 0x200   :  { %637 = vxpose.xlu1.b32.start.end [1/1] (short) (narrow) %v443_v36, 8  ;;  %605 = vxpose.xlu0.b32.start.end [1/1] (short) (narrow) %v442_v35, 8 }
 0x204   :  { %669 = vxpose.xlu0.b32.start.end [1/1] (short) (narrow) %v444_v37, 8 }
 0x273   :  { %v493_v38 = vpop.trf.xlu1 }
 0x274   :  { %v461_v39 = vpop.trf.xlu0  ;;  %v705_v40 = vsel %vm701_vm9, %v493_v38, -inf }
 0x275   :  { %706 = vmax.xlane.f32.xlu0 %v705_v40  ;;  %v702_v41 = vsel %vm701_vm9, %v461_v39, -inf }
 0x276   :  { %703 = vmax.xlane.f32.xlu1 %v702_v41 }
 0x278   :  { %v557_v42 = vpop.trf.xlu0 }
 0x279   :  { %v711_v50 = vsel %vm701_vm9, %v557_v42, -inf }
 0x27c   :  { %v589_v43 = vpop.trf.xlu1  ;;  %v525_v44 = vpop.trf.xlu0 }
 0x27d   :  { %v714_v45 = vsel %vm701_vm9, %v589_v43, -inf  ;;  %v708_v46 = vsel %vm701_vm9, %v525_v44, -inf }
 0x27e   :  { %715 = vmax.xlane.f32.xlu0 %v714_v45  ;;  %709 = vmax.xlane.f32.xlu1 %v708_v46 }
 0x280   :  { %v653_v47 = vpop.trf.xlu1  ;;  %v621_v48 = vpop.trf.xlu0 }
 0x281   :  { %v720_v49 = vsel %vm701_vm9, %v653_v47, -inf  ;;  %v717_v51 = vsel %vm701_vm9, %v621_v48, -inf }
 0x282   :  { %721 = vmax.xlane.f32.xlu0 %v720_v49  ;;  %712 = vmax.xlane.f32.xlu1 %v711_v50 }
 0x284   :  { %v685_v52 = vpop.trf.xlu0 }
 0x285   :  { %v723_v53 = vsel %vm701_vm9, %v685_v52, -inf }
 0x286   :  { %718 = vmax.xlane.f32.xlu1 %v717_v51 }
 0x28a   :  { %724 = vmax.xlane.f32.xlu1 %v723_v53 }
 0x302   :  { %v707_v54 = vpop.xlane.xlu0 %706 }
 0x303   :  { %v727_v55 = vsub.f32 %v493_v38, %v707_v54  ;;  %v704_v56 = vpop.xlane.xlu1 %703  ;;  %v2152_v38 = vmov 0.0  }
 0x304   :  { %v726_v57 = vsub.f32 %v461_v39, %v704_v56  ;;  %1872 = vmatprep.subr.mxu1 %v2152_v38  ;;  %1882 = vmatprep.subr.mxu0 %v2152_v38  ;;  %v1388_v56 = vld [vmem:[#allocation7 + $0x20] sm:$0xff] }
 0x305   :  { %v736_v58 = vmul.f32 1.442695, %v727_v55  ;;  %1873 = vmatpush3.msra.mxu1 %v2274_v5  ;;  %1883 = vmatpush3.msra.mxu0 %v2292_v11 }
 0x306   :  { %v734_v59 = vmul.f32 1.442695, %v726_v57  ;;  %1874 = vmatprep.mubr.msk.f32.mxu1 %vm2153_vm10, %v2152_v38  ;;  %1877 = vmatprep.subr.mxu1 %v2152_v38  ;;  %v1389_v57 = vld [vmem:[#allocation7 + $0x28] sm:$0xff] }
 0x307   :  { %1991 = vpow2.f32 %v736_v58  ;;  %1884 = vmatprep.mubr.msk.f32.mxu0 %vm2153_vm10, %v2152_v38  ;;  %1892 = vmatprep.subr.mxu0 %v2152_v38  ;;  %v1383_v58 = vld [vmem:[#allocation7] sm:$0xff] }
 0x308   :  { %1993 = vpow2.f32 %v734_v59  ;;  %v1962_v59 = vpack.c.bf16 %v1389_v57, %v1388_v56  ;;  %v1587_v56 = vld [vmem:[#allocation2] sm:$0xff] }
 0x30b   :  { %v710_v60 = vpop.xlane.xlu1 %709  ;;  %v716_v61 = vpop.xlane.xlu0 %715 }
 0x30c   :  { %v728_v62 = vsub.f32 %v525_v44, %v710_v60  ;;  %v730_v63 = vsub.f32 %v589_v43, %v716_v61  ;;  %v2154_v60 = vmov 0.0|0.0  }
 0x30e   :  { %v738_v0 = vmul.f32 1.442695, %v728_v62  ;;  %v742_v1 = vmul.f32 1.442695, %v730_v63  ;;  %v1390_v62 = vld [vmem:[#allocation7 + $0x30] sm:$0xff]  ;;  %v1391_v63 = vld [vmem:[#allocation7 + $0x38] sm:$0xff] }
 0x30f   :  { %v713_v2 = vpop.xlane.xlu1 %712  ;;  %v722_v3 = vpop.xlane.xlu0 %721 }
 0x310   :  { %1995 = vpow2.f32 %v738_v0  ;;  %v729_v4 = vsub.f32 %v557_v42, %v713_v2  ;;  %v732_v6 = vsub.f32 %v653_v47, %v722_v3  ;;  %v1385_v0 = vld [vmem:[#allocation7 + $0x10] sm:$0xff]  ;;  %v1386_v2 = vld [vmem:[#allocation7 + $0x18] sm:$0xff] }
 0x311   :  { %v1992_v7 = vpop.eup %1991  ;;  %1997 = vpow2.f32 %v742_v1  ;;  %v1965_v1 = vpack.c.bf16 %v1391_v63, %v1390_v62  ;;  %v1971_v3 = vpack.c.bf16 %v1386_v2, %v1385_v0  ;;  %v1619_v0 = vld [vmem:[%s2528_s10] sm:$0xff] }
 0x312   :  { %v1994_v8 = vpop.eup %1993  ;;  %v740_v9 = vmul.f32 1.442695, %v729_v4  ;;  %v746_v17 = vmul.f32 1.442695, %v732_v6  ;;  %v753_v18 = vsel %vm701_vm9, %v1992_v7, 0.0 }
 0x313   :  { %v719_v19 = vpop.xlane.xlu1 %718  ;;  %754 = vadd.xlane.f32.xlu1 %v753_v18  ;;  %v750_v20 = vsel %vm701_vm9, %v1994_v8, 0.0 }
 0x314   :  { %1999 = vpow2.f32 %v740_v9  ;;  %v731_v21 = vsub.f32 %v621_v48, %v719_v19  ;;  %751 = vadd.xlane.f32.xlu0 %v750_v20 }
 0x315   :  { %2001 = vpow2.f32 %v746_v17 }
 0x316   :  { %v744_v22 = vmul.f32 1.442695, %v731_v21 }
 0x317   :  { %v725_v23 = vpop.xlane.xlu1 %724 }
 0x318   :  { %2003 = vpow2.f32 %v744_v22  ;;  %v733_v24 = vsub.f32 %v685_v52, %v725_v23 }
 0x31a   :  { %v1996_v25 = vpop.eup %1995  ;;  %v748_v26 = vmul.f32 1.442695, %v733_v24 }
 0x31b   :  { %v756_v27 = vsel %vm701_vm9, %v1996_v25, 0.0  ;;  %v2380_v28 = vpop.eup %1997 }
 0x31c   :  { %2005 = vpow2.f32 %v748_v26  ;;  %757 = vadd.xlane.f32.xlu0 %v756_v27  ;;  %v762_v31 = vsel %vm701_vm9, %v2380_v28, 0.0 }
 0x31e   :  { %v2382_v29 = vpop.eup %1999 }
 0x31f   :  { %v759_v30 = vsel %vm701_vm9, %v2382_v29, 0.0  ;;  %v2388_v32 = vpop.eup %2001 }
 0x320   :  { %760 = vadd.xlane.f32.xlu1 %v759_v30  ;;  %763 = vadd.xlane.f32.xlu0 %v762_v31  ;;  %v768_v35 = vsel %vm701_vm9, %v2388_v32, 0.0 }
 0x322   :  { %v2390_v33 = vpop.eup %2003 }
 0x323   :  { %v765_v34 = vsel %vm701_vm9, %v2390_v33, 0.0 }
 0x324   :  { %766 = vadd.xlane.f32.xlu1 %v765_v34  ;;  %769 = vadd.xlane.f32.xlu0 %v768_v35 }
 0x326   :  { %v2396_v36 = vpop.eup %2005 }
 0x327   :  { %v771_v37 = vsel %vm701_vm9, %v2396_v36, 0.0 }
 0x328   :  { %772 = vadd.xlane.f32.xlu1 %v771_v37 }
 0x3a0   :  { %v755_v39 = vpop.xlane.xlu1 %754 }
 0x3a1   :  { %2007 = vrcp.f32 %v755_v39  ;;  %v752_v40 = vpop.xlane.xlu0 %751 }
 0x3a2   :  { %2009 = vrcp.f32 %v752_v40 }
 0x3a9   :  { %v758_v41 = vpop.xlane.xlu0 %757 }
 0x3aa   :  { %2011 = vrcp.f32 %v758_v41 }
 0x3ab   :  { %v2008_v5 = vpop.eup %2007 }
 0x3ac   :  { %v2010_v42 = vpop.eup %2009  ;;  %v777_v11 = vmul.f32 %v2008_v5, %v1992_v7 }
 0x3ad   :  { %v775_v43 = vmul.f32 %v2010_v42, %v1994_v8  ;;  %v761_v44 = vpop.xlane.xlu1 %760  ;;  %v764_v45 = vpop.xlane.xlu0 %763 }
 0x3ae   :  { %791 = vst.msk [vmem:[#allocation9 + $0x2] sm:$0x3] %vm701_vm9, %v777_v11  ;;  %2013 = vrcp.f32 %v761_v44 }
 0x3af   :  { %790 = vst.msk [vmem:[#allocation9] sm:$0x3] %vm701_vm9, %v775_v43  ;;  %2015 = vrcp.f32 %v764_v45  ;;  %1875 = vmatmul.mubr.msk.f32.vlgmr.msra.gmra.mrb[8].mxu1 %vm798_vm11, %v775_v43 }
 0x3b0   :  { %1878 = vmatpush3.msra.mxu1 %v2287_v10  ;;  %1879 = vmatprep.mubr.msk.f32.mxu1 %vm2153_vm10, %v2152_v38 }
 0x3b1   :  { %v767_v46 = vpop.xlane.xlu1 %766  ;;  %v770_v47 = vpop.xlane.xlu0 %769  ;;  %1887 = vmatprep.subr.mxu1 %v2152_v38 }
 0x3b2   :  { %2017 = vrcp.f32 %v767_v46 }
 0x3b3   :  { %2019 = vrcp.f32 %v770_v47  ;;  %1880 = vmatmul.mubr.msk.f32.vlgmr.msra.gmra.mrb[10].mxu1 %vm798_vm11, %v777_v11 }
 0x3b4   :  { %v2012_v48 = vpop.eup %2011  ;;  %1888 = vmatpush3.msra.mxu1 %v2301_v12  ;;  %1889 = vmatprep.mubr.msk.f32.mxu1 %vm2153_vm10, %v2152_v38 }
 0x3b5   :  { %v779_v49 = vmul.f32 %v2012_v48, %v1996_v25  ;;  %v773_v50 = vpop.xlane.xlu1 %772  ;;  %1897 = vmatprep.subr.mxu1 %v2152_v38 }
 0x3b6   :  { %2021 = vrcp.f32 %v773_v50 }
 0x3b7   :  { %792 = vst.msk [vmem:[#allocation9 + $0x4] sm:$0x3] %vm701_vm9, %v779_v49  ;;  %1885 = vmatmul.mubr.msk.f32.vlgmr.msra.gmra.mrb[8].mxu0 %vm798_vm11, %v779_v49 }
 0x3b8   :  { %v2014_v10 = vpop.eup %2013  ;;  %1893 = vmatpush3.msra.mxu0 %v2306_v13  ;;  %1894 = vmatprep.mubr.msk.f32.mxu0 %vm2153_vm10, %v2152_v38 }
 0x3b9   :  { %v2016_v51 = vpop.eup %2015  ;;  %v781_v12 = vmul.f32 %v2014_v10, %v2382_v29  ;;  %1902 = vmatprep.subr.mxu0 %v2152_v38 }
 0x3ba   :  { %v783_v52 = vmul.f32 %v2016_v51, %v2380_v28 }
 0x3bb   :  { %793 = vst.msk [vmem:[#allocation9 + $0x6] sm:$0x3] %vm701_vm9, %v781_v12  ;;  %1890 = vmatmul.mubr.msk.f32.vlgmr.msra.gmra.mrb[12].mxu1 %vm798_vm11, %v781_v12 }
 0x3bc   :  { %v2018_v53 = vpop.eup %2017  ;;  %794 = vst.msk [vmem:[#allocation9 + $0x8] sm:$0x3] %vm701_vm9, %v783_v52  ;;  %1895 = vmatmul.mubr.msk.f32.vlgmr.msra.gmra.mrb[10].mxu0 %vm798_vm11, %v783_v52  ;;  %1898 = vmatpush3.msra.mxu1 %v2315_v14 }
 0x3bd   :  { %v2020_v13 = vpop.eup %2019  ;;  %v785_v54 = vmul.f32 %v2018_v53, %v2390_v33  ;;  %1899 = vmatprep.mubr.msk.f32.mxu1 %vm2153_vm10, %v2152_v38  ;;  %1903 = vmatpush3.msra.mxu0 %v2320_v15 }
 0x3be   :  { %v787_v55 = vmul.f32 %v2020_v13, %v2388_v32  ;;  %1904 = vmatprep.mubr.msk.f32.mxu0 %vm2153_vm10, %v2152_v38  ;;  %1907 = vmatprep.subr.mxu1 %v2152_v38 }
 0x3bf   :  { %795 = vst.msk [vmem:[#allocation9 + $0xa] sm:$0x3] %vm701_vm9, %v785_v54  ;;  %1900 = vmatmul.mubr.msk.f32.vlgmr.msra.gmra.mrb[14].mxu1 %vm798_vm11, %v785_v54  ;;  %1961 = vmatprep.subr.bf16.mxu0 %v2154_v60  ;;  %v1771_v54 = vld [vmem:[%s2525_s7] ss:$0 sm:$0xff] }
 0x3c0   :  { %v2022_v14 = vpop.eup %2021  ;;  %796 = vst.msk [vmem:[#allocation9 + $0xc] sm:$0x3] %vm701_vm9, %v787_v55  ;;  %1905 = vmatmul.mubr.msk.f32.vlgmr.msra.gmra.mrb[12].mxu0 %vm798_vm11, %v787_v55  ;;  %1908 = vmatpush3.msra.mxu1 %v2329_v16  ;;  %v1384_v16 = vld [vmem:[#allocation7 + $0x8] sm:$0xff] }
 0x3c1   :  { %v789_v15 = vmul.f32 %v2022_v14, %v2396_v36  ;;  %1909 = vmatprep.mubr.msk.f32.mxu1 %vm2153_vm10, %v2152_v38  ;;  %1920 = vmatprep.mubr.msk.f32.mxu0 %vm2153_vm10, %v2152_v38  ;;  %v1968_v61 = vpack.c.bf16 %v1384_v16, %v1383_v58 }
 0x3c2   :  { %1967 = vmatprep.subr.bf16.mxu1 %v2154_v60  ;;  %1963 = vmatpush3.bf16.msra.mxu0 %v1962_v59 }
 0x3c3   :  { %797 = vst.msk [vmem:[#allocation9 + $0xe] sm:$0x3] %vm701_vm9, %v789_v15  ;;  %1910 = vmatmul.mubr.msk.f32.vlgmr.msra.gmra.mrb[16].mxu1 %vm798_vm11, %v789_v15  ;;  %1964 = vmatprep.subr.bf16.mxu0 %v2154_v60 }
 0x3c4   :  { %1931 = vmatprep.mubr.msk.f32.mxu1 %vm2153_vm10, %v2152_v38  ;;  %1969 = vmatpush3.bf16.msra.mxu1 %v1968_v61 }
 0x3c5   :  { %1970 = vmatprep.subr.bf16.mxu1 %v2154_v60 }
 0x3c6   :  { %1966 = vmatpush3.bf16.msra.mxu0 %v1965_v1  ;;  %v1620_v1 = vld [vmem:[%s2528_s10 + $0x8] sm:$0xff] }
 0x3c7   :  { %1973 = vmatprep.subr.bf16.mxu0 %v2154_v60  ;;  %v1974_v2 = vpack.c.bf16 %v1620_v1, %v1619_v0 }
 0x3c8   :  { %1972 = vmatpush3.bf16.msra.mxu1 %v1971_v3  ;;  %v1621_v3 = vld [vmem:[%s2528_s10 + $0x10] sm:$0xff] }
 0x482   :  { %v868_v4 = vpop.f32.mrb[8].mxu1 }
 0x483   :  { %v1876_v6 = vpop.f32.mrb[9].mxu1  ;;  %v1400_v7 = vrot.slane %v868_v4, 1 }
 0x486   :  { %v941_v8 = vpop.f32.mrb[10].mxu1 }
 0x487   :  { %v1402_v9 = vsel %vm1401_vm12, %v941_v8, %v1400_v7  ;;  %v1493_v17 = vrot.slane %v941_v8, 7  ;;  %v1881_v18 = vpop.f32.mrb[11].mxu1 }
 0x488   :  { %v1772_v18 = vld [vmem:[%s2526_s8] ss:$0 sm:$0xff] }
 0x489   :  { %v1494_v19 = vsel %vm1401_vm12, %v1493_v17, %v868_v4  ;;  %v1622_v4 = vld [vmem:[%s2528_s10 + $0x18] sm:$0xff]  ;;  %s2155_s10 = smov [#allocation9]  }
 0x48a   :  { %v1014_v20 = vpop.f32.mrb[8].mxu0  ;;  %v1977_v6 = vpack.c.bf16 %v1622_v4, %v1621_v3  ;;  %s1726_s30 = sshll.u32 %s2155_s10, 4  ;;  %s1727_s30 = int_to_ptr.vmem [resolvable:$true] %s1726_s30 }
 0x48b   :  { %v1403_v21 = vrot.slane %v1014_v20, 7  ;;  %v1495_v22 = vrot.slane %v1014_v20, 6  ;;  %v1886_v23 = vpop.f32.mrb[9].mxu0  ;;  %s2095_s1 = scalar_lea.vmem %s1727_s30, 256  ;;  %p2100_p11 = scmp.lt.s32.totalorder %s1727_s30, %s1727_s30 }
 0x48c   :  { %p2096_p10 = scmp.ne.s32.totalorder %s1727_s30, %s2095_s1  ;;  %p2101_p12 = scmp.lt.s32.totalorder %s2095_s1, %s2095_s1 }
 0x48d   :  { %v1405_v24 = vsel %vm1404_vm13, %v1403_v21, %v1402_v9  ;;  %v1496_v25 = vsel %vm1404_vm13, %v1495_v22, %v1494_v19  ;;  %v1773_v19 = vld [vmem:[%s2527_s9] ss:$0 sm:$0xff] }
 0x48e   :  { %v1087_v26 = vpop.f32.mrb[12].mxu1  ;;  %p2102_p13 = por %p2101_p12, %p2100_p11 }
 0x48f   :  { %v1406_v27 = vrot.slane %v1087_v26, 6  ;;  %v1497_v28 = vrot.slane %v1087_v26, 5  ;;  %v1160_v29 = vpop.f32.mrb[10].mxu0  ;;  %v1891_v30 = vpop.f32.mrb[13].mxu1 }
 0x490   :  { %v1409_v31 = vrot.slane %v1160_v29, 5  ;;  %v1499_v32 = vrot.slane %v1160_v29, 4  ;;  %v1896_v33 = vpop.f32.mrb[11].mxu0  ;;  %p2103_p0 = pnand %p2102_p13, %p2096_p10 }
 0x491   :  { %v1408_v34 = vsel %vm1407_vm14, %v1406_v27, %v1405_v24  ;;  %v1498_v35 = vsel %vm1407_vm14, %v1497_v28, %v1496_v25 }
 0x492   :  { %v1411_v36 = vsel %vm1410_vm15, %v1409_v31, %v1408_v34  ;;  %v1500_v37 = vsel %vm1410_vm15, %v1499_v32, %v1498_v35  ;;  %v1233_v39 = vpop.f32.mrb[14].mxu1 }
 0x493   :  { %v1412_v40 = vrot.slane %v1233_v39, 4  ;;  %v1501_v41 = vrot.slane %v1233_v39, 3  ;;  %v1306_v5 = vpop.f32.mrb[12].mxu0  ;;  %v1901_v42 = vpop.f32.mrb[15].mxu1 }
 0x494   :  { %v1415_v11 = vrot.slane %v1306_v5, 3  ;;  %v1503_v43 = vrot.slane %v1306_v5, 2  ;;  %v1906_v44 = vpop.f32.mrb[13].mxu0 }
 0x495   :  { %v1414_v45 = vsel %vm1413_vm1, %v1412_v40, %v1411_v36  ;;  %v1502_v46 = vsel %vm1413_vm1, %v1501_v41, %v1500_v37 }
 0x496   :  { %v1417_v47 = vsel %vm1416_vm2, %v1415_v11, %v1414_v45  ;;  %v1504_v48 = vsel %vm1416_vm2, %v1503_v43, %v1502_v46  ;;  %v1379_v49 = vpop.f32.mrb[16].mxu1 }
 0x497   :  { %v1418_v50 = vrot.slane %v1379_v49, 2  ;;  %v1505_v10 = vrot.slane %v1379_v49, 1  ;;  %v1911_v51 = vpop.f32.mrb[17].mxu1 }
 0x499   :  { %v1420_v12 = vsel %vm1419_vm3, %v1418_v50, %v1417_v47  ;;  %v1506_v52 = vsel %vm1419_vm3, %v1505_v10, %v1504_v48 }
 0x49a   :  { %1921 = vmatmul.mubr.msk.f32.vlgmr.msra.gmra.mrb[14].mxu0 %vm103_vm0, %v1420_v12  ;;  %1932 = vmatmul.mubr.msk.f32.vlgmr.msra.gmra.mrb[18].mxu1 %vm103_vm0, %v1506_v52 }
 0x49b   :  { %1942 = vmatprep.mubr.msk.f32.mxu0 %vm2153_vm10, %v2152_v38  ;;  %1975 = vmatpush3.bf16.msra.mxu0 %v1974_v2 }
 0x49c   :  { %1976 = vmatprep.subr.bf16.mxu0 %v2154_v60 }
 0x49f   :  { %1978 = vmatpush3.bf16.msra.mxu0 %v1977_v6 }
 0x56d   :  { %v1489_v53 = vpop.f32.mrb[14].mxu0  ;;  %v1575_v13 = vpop.f32.mrb[18].mxu1 }
 0x56e   :  { %v1576_v55 = vadd.f32 %v1575_v13, %v1489_v53  ;;  %v1922_v14 = vpop.f32.mrb[15].mxu0  ;;  %v1933_v15 = vpop.f32.mrb[19].mxu1 }
 0x570   :  { %v1586_v57 = vadd.f32 %v1771_v54, %v1576_v55 }
 0x572   :  { %v1588_v58 = vadd.f32 %v1587_v56, %v1586_v57 }
 0x574   :  { %v1589_v59 = vsel %vm103_vm0, %v1588_v58, 0.0 }
 0x575   :  { %1590 = vadd.xlane.f32.xlu0 %v1589_v59 }
 0x602   :  { %v1591_v16 = vpop.xlane.xlu0 %1590 }
 0x603   :  { %v1593_v61 = vmul.f32 0.03125, %v1591_v16 }
 0x605   :  { %v1594_v62 = vsub.f32 %v1588_v58, %v1593_v61 }
 0x607   :  { %v1595_v63 = vmul.f32 %v1594_v62, %v1594_v62 }
 0x609   :  { %v1596_v38 = vsel %vm103_vm0, %v1595_v63, 0.0 }
 0x60a   :  { %1597 = vadd.xlane.f32.xlu1 %v1596_v38 }
 0x697   :  { %v1598_v7 = vpop.xlane.xlu1 %1597 }
 0x698   :  { %v1599_v8 = vmul.f32 0.03125, %v1598_v7 }
 0x69a   :  { %v1600_v9 = vadd.f32 1e-05, %v1599_v8 }
 0x69c   :  { %2023 = vrsqrt.f32 %v1600_v9 }
 0x6a6   :  { %v2024_v17 = vpop.eup %2023 }
 0x6a7   :  { %v1602_v60 = vmul.f32 %v2024_v17, %v1594_v62 }
 0x6a9   :  { %v1610_v20 = vmul.f32 %v1772_v18, %v1602_v60 }
 0x6ab   :  { %v1618_v21 = vadd.f32 %v1773_v19, %v1610_v20 }
 0x6ad   :  { %1943 = vmatmul.mubr.msk.f32.vlgmr.msra.gmra.mrb[16].mxu0 %vm103_vm0, %v1618_v21 }
 0x6ae   :  { %2106 = shalt.err (!%p2103_p0)
}
 0x6af   :  { %s2107_s14 = scalar_lea.hbm %s2531_s13, 256 }
 0x6b0   :  { %p2108_p1 = scmp.ne.s32.totalorder %s2531_s13, %s2107_s14  ;;  %p2111_p2 = scmp.lt.u32.totalorder %s2107_s14, %s2531_s13 }
 0x6b2   :  { %p2113_p3 = pnand %p2111_p2, %p2108_p1 }
 0x6b4   :  { %2116 = shalt.err (!%p2113_p3)
}
 0x6b5   :  { %s2156_s0 = smov 32   ;;  %s2157_s4 = smov 2   ;;  %v1774_v22 = vld [vmem:[%s2529_s11] ss:$0 sm:$0xff]  ;;  %vm1709_vm0 = vcmask 130048  }
 0x6b6   :  { %1732 = dma.vmem_to_hbm [thread:$0]  %s1727_s30, 256, %s2531_s13, [#allocation10], %s2156_s0, %s2156_s0, %s2157_s4  }
 0x6b7   :  { %s2158_s16 = smov [#allocation8]  }
 0x6b8   :  { %s1717_s2 = sshll.u32 %s2158_s16, 4  ;;  %s1718_s2 = int_to_ptr.vmem [resolvable:$true] %s1717_s2 }
 0x6b9   :  { %s2117_s7 = scalar_lea.vmem %s1718_s2, 128  ;;  %p2122_p5 = scmp.lt.s32.totalorder %s1718_s2, %s1718_s2 }
 0x6ba   :  { %p2118_p4 = scmp.ne.s32.totalorder %s1718_s2, %s2117_s7  ;;  %p2123_p6 = scmp.lt.s32.totalorder %s2117_s7, %s2117_s7 }
 0x6bc   :  { %p2124_p7 = por %p2123_p6, %p2122_p5 }
 0x6be   :  { %p2125_p8 = pnand %p2124_p7, %p2118_p4 }
 0x780   :  { %v1699_v23 = vpop.f32.mrb[16].mxu0 }
 0x781   :  { %v1700_v24 = vadd.f32 %v1774_v22, %v1699_v23  ;;  %v1944_v25 = vpop.f32.mrb[17].mxu0 }
 0x783   :  { %v1776_v26 = vmul.f32 -1.442695, %v1700_v24 }
 0x785   :  { %2025 = vpow2.f32 %v1776_v26 }
 0x78f   :  { %v2026_v27 = vpop.eup %2025 }
 0x790   :  { %v1706_v28 = vadd.f32 1.0, %v2026_v27 }
 0x792   :  { %2027 = vrcp.f32 %v1706_v28 }
 0x79c   :  { %v2028_v29 = vpop.eup %2027 }
 0x79d   :  { %1710 = vst.msk [vmem:[#allocation8] sm:$0xff] %vm1709_vm0, %v2028_v29 }
 0x79e   :  { %2128 = shalt.err (!%p2125_p8)
}
 0x79f   :  { %s2129_s26 = scalar_lea.hbm %s2530_s12, 128 }
 0x7a0   :  { %p2130_p9 = scmp.ne.s32.totalorder %s2530_s12, %s2129_s26  ;;  %p2133_p10 = scmp.lt.u32.totalorder %s2129_s26, %s2530_s12 }
 0x7a2   :  { %p2135_p11 = pnand %p2133_p10, %p2130_p9 }
 0x7a4   :  { %2138 = shalt.err (!%p2135_p11)
}
 0x7a5   :  { %1720 = dma.vmem_to_hbm [thread:$0]  %s1718_s2, 128, %s2530_s12, [#allocation4]  }
 0x7a6   :  { %2143 = dma.done.wait [#allocation4], 128  }
 0x7a7   :  { %2144 = vsyncadd [#allocation4], 4294967168 }
 0x7a8   :  { %2145 = dma.done.wait [#allocation10], 256  }
 0x7a9   :  { %2146 = vsyncadd [#allocation10], 4294967040 }
 0x7aa   :  { %1739 = vsyncpa [#allocation3], 1 }
 0x7ab   :  { %1740 = vsyncpa [#allocation6], 1 }
 0x7ac   :  { %1741 = vsyncpa [#allocation4], 1 }
 0x7ad   :  { %1742 = vsyncpa [#allocation10], 1 }

</bundles_post_ra>
